<compile_context>
chip_gen: v6e
topology: v6e:2x2x1
jax: 0.10.0
libtpu: 0.0.40
codegen_flags: <defaults>
</compile_context>

<pallas_src>
import functools
import math

import jax
import jax.numpy as jnp
from jax.experimental import pallas as pl
from jax.experimental.pallas import tpu as pltpu


def _san_kernel(x_ref, wqkv_ref, bqkv_ref, wout_ref, vecs_ref, o_ref, *, nhead, eps):
    # x_ref block: (Nb, L, E) -> a chunk of batch elements
    nb, L, E = x_ref.shape
    hd = E // nhead

    x2d = x_ref[...].reshape(nb * L, E)                       # rows ordered b*L + l

    # ---- fused in-projection: ONE (Nb*L, E) @ (E, 3E) MXU matmul ----
    # (q-scale already folded into the first E columns of wqkv / entries of bqkv)
    qkv = jnp.dot(x2d, wqkv_ref[...], preferred_element_type=jnp.float32) + bqkv_ref[...]

    b_out = vecs_ref[0:1, :]                                  # (1, E)
    gamma = vecs_ref[1:2, :]                                  # (1, E)
    beta = vecs_ref[2:3, :]                                   # (1, E)

    # ---- attention per head, batched over the Nb batch elements ----
    # Out-projection is linear over head outputs, so accumulate it per head
    # instead of concatenating head outputs along the lane axis. The accumulator
    # is seeded with residual + out-proj bias (dropout = identity in eval).
    # TODO(synk): attn_mask / key_padding_mask not supported (forward called with None).
    y = x2d + b_out
    for h in range(nhead):
        q = qkv[:, h * hd:(h + 1) * hd].reshape(nb, L, hd)
        k = qkv[:, E + h * hd:E + (h + 1) * hd].reshape(nb, L, hd)
        v = qkv[:, 2 * E + h * hd:2 * E + (h + 1) * hd].reshape(nb, L, hd)

        s = jnp.einsum('bld,bmd->blm', q, k, preferred_element_type=jnp.float32)
        s = s - jnp.max(s, axis=-1, keepdims=True)
        p = jnp.exp(s)
        p = p * pl.reciprocal(jnp.sum(p, axis=-1, keepdims=True), approx=True)
        o = jnp.einsum('blm,bmd->bld', p, v, preferred_element_type=jnp.float32)

        # partial out-projection for this head: (Nb*L, Dh) @ (Dh, E)
        y = y + jnp.dot(o.reshape(nb * L, hd),
                        wout_ref[h * hd:(h + 1) * hd, :],
                        preferred_element_type=jnp.float32)

    # ---- LayerNorm over E (one-pass variance, rsqrt on the EUP) ----
    mu = jnp.mean(y, axis=-1, keepdims=True)
    var = jnp.mean(y * y, axis=-1, keepdims=True) - mu * mu
    yn = (y - mu) * jax.lax.rsqrt(var + eps)
    o_ref[...] = (yn * gamma + beta).reshape(nb, L, E)


def _pick_batch_block(n):
    """Batch rows per program. Keeps >=2 grid steps when the batch is big enough
    (v7x megacore) and uses sublane-friendly multiples of 8 for larger batches."""
    if n < 16:
        return n                      # tiny batch: one program does everything
    nb = 8
    while nb < 32 and n % (nb * 2) == 0 and n // (nb * 2) >= 2:
        nb *= 2
    return nb


def san_forward(src, params, *, nhead, eps=1e-5, batch_block=None):
    """src: (L, N, E) float32, matching nn.MultiheadAttention default layout."""
    L, N, E = src.shape
    assert E % nhead == 0
    hd = E // nhead
    scale = 1.0 / math.sqrt(hd)

    # ---- one-time parameter transforms (no per-step transposes in the kernel) ----
    w_in = params["in_proj_weight"]                       # (3E, E)
    b_in = params["in_proj_bias"]                         # (3E,)
    w_in = w_in.at[:E].multiply(scale)                    # fold q-scale into W_q
    b_in = b_in.at[:E].multiply(scale)
    w_in_t = jnp.transpose(w_in)                          # (E, 3E)
    b_in_row = b_in.reshape(1, 3 * E)
    w_out_t = jnp.transpose(params["out_proj_weight"])    # (E, E), rows = (head, dh)
    vecs = jnp.stack([params["out_proj_bias"],
                      params["ln_weight"],
                      params["ln_bias"]], axis=0)         # (3, E) packed broadcasts

    nb = batch_block if batch_block is not None else _pick_batch_block(N)
    n_pad = nb * pl.cdiv(N, nb)

    x = jnp.transpose(src, (1, 0, 2))                     # (N, L, E)
    if n_pad != N:
        x = jnp.pad(x, ((0, n_pad - N), (0, 0), (0, 0)))

    kernel = functools.partial(_san_kernel, nhead=nhead, eps=eps)

    out = pl.pallas_call(
        kernel,
        out_shape=jax.ShapeDtypeStruct((n_pad, L, E), jnp.float32),
        grid=(n_pad // nb,),
        in_specs=[
            pl.BlockSpec((nb, L, E), lambda b: (b, 0, 0)),    # x (batch chunk)
            pl.BlockSpec((E, 3 * E), lambda b: (0, 0)),       # W_in^T  (resident)
            pl.BlockSpec((1, 3 * E), lambda b: (0, 0)),       # b_in
            pl.BlockSpec((E, E), lambda b: (0, 0)),           # W_out^T (resident)
            pl.BlockSpec((3, E), lambda b: (0, 0)),           # [b_out; gamma; beta]
        ],
        out_specs=pl.BlockSpec((nb, L, E), lambda b: (b, 0, 0)),
        compiler_params=pltpu.CompilerParams(dimension_semantics=("parallel",)),
    )(x, w_in_t, b_in_row, w_out_t, vecs)

    if n_pad != N:
        out = out[:N]
    return jnp.transpose(out, (1, 0, 2))                  # back to (L, N, E)


def san_reference(src, params, *, nhead, eps=1e-5):
    """Pure-JAX reference of the same forward pass (eval mode)."""
    L, N, E = src.shape
    hd = E // nhead
    scale = 1.0 / math.sqrt(hd)
    win, bin_ = params["in_proj_weight"], params["in_proj_bias"]
    wout, bout = params["out_proj_weight"], params["out_proj_bias"]
    gamma, beta = params["ln_weight"], params["ln_bias"]

    qkv = jnp.einsum("lne,fe->lnf", src, win) + bin_        # (L, N, 3E)
    q, k, v = jnp.split(qkv, 3, axis=-1)

    def heads(t):  # (L, N, E) -> (N, H, L, Dh)
        return jnp.transpose(t.reshape(L, N, nhead, hd), (1, 2, 0, 3))

    qh, kh, vh = heads(q) * scale, heads(k), heads(v)
    s = jnp.einsum("nhld,nhmd->nhlm", qh, kh)
    p = jax.nn.softmax(s, axis=-1)
    o = jnp.einsum("nhlm,nhmd->nhld", p, vh)                # (N, H, L, Dh)
    o = jnp.transpose(o, (2, 0, 1, 3)).reshape(L, N, E)
    src2 = jnp.einsum("lne,fe->lnf", o, wout) + bout
    y = src + src2
    mu = jnp.mean(y, axis=-1, keepdims=True)
    var = jnp.mean((y - mu) ** 2, axis=-1, keepdims=True)
    return (y - mu) * jax.lax.rsqrt(var + eps) * gamma + beta


def init_params(key, model_dim):
    """Deterministic synthetic parameters (shapes match nn.MultiheadAttention + LayerNorm)."""
    k1, k2, k3, k4 = jax.random.split(key, 4)
    E = model_dim
    bound = 1.0 / math.sqrt(E)
    return {
        "in_proj_weight": jax.random.uniform(k1, (3 * E, E), jnp.float32, -bound, bound),
        "in_proj_bias": jax.random.uniform(k3, (3 * E,), jnp.float32, -bound, bound),
        "out_proj_weight": jax.random.uniform(k2, (E, E), jnp.float32, -bound, bound),
        "out_proj_bias": jax.random.uniform(k4, (E,), jnp.float32, -bound, bound),
        "ln_weight": jnp.ones((E,), jnp.float32),
        "ln_bias": jnp.zeros((E,), jnp.float32),
    }


if __name__ == "__main__":
    L, N, E, NHEAD = 8, 2, 32, 4   # seq=8, batch=2, model=32, heads=4

    key = jax.random.PRNGKey(0)
    k_src, k_par = jax.random.split(key)
    src = jax.random.normal(k_src, (L, N, E), dtype=jnp.float32)
    params = init_params(k_par, E)

    out = san_forward(src, params, nhead=NHEAD)
    out = jax.block_until_ready(out)

    ref = jax.block_until_ready(san_reference(src, params, nhead=NHEAD))
    assert out.shape == (L, N, E)
    # tolerance accounts for the EUP approximate reciprocal in the softmax denominator
    assert jnp.allclose(out, ref, atol=2e-3, rtol=2e-3), "mismatch vs. pure-JAX reference"

    print("KERNEL_OK")
</pallas_src>

<mosaic_0001>
module attributes {stable_mosaic.version = 11 : i64} {
  func.func @_san_kernel(%arg0: i32, %arg1: memref<2x8x32xf32, #tpu.memory_space<vmem>>, %arg2: memref<32x96xf32, #tpu.memory_space<vmem>>, %arg3: memref<1x96xf32, #tpu.memory_space<vmem>>, %arg4: memref<32x32xf32, #tpu.memory_space<vmem>>, %arg5: memref<3x32xf32, #tpu.memory_space<vmem>>, %arg6: memref<2x8x32xf32, #tpu.memory_space<vmem>>) attributes {dimension_semantics = [#tpu.dimension_semantics<parallel>], iteration_bounds = array<i64: 1>, scalar_prefetch = 0 : i64, scratch_operands = 0 : i64, tpu.core_type = #tpu.core_type<tc>, window_params = [{transform_indices = @transform_0, window_bounds = array<i64: 2, 8, 32>}, {pipeline_mode = #tpu.pipeline_mode<synchronous>, transform_indices = @transform_1, window_bounds = array<i64: 32, 96>}, {pipeline_mode = #tpu.pipeline_mode<synchronous>, transform_indices = @transform_2, window_bounds = array<i64: 1, 96>}, {pipeline_mode = #tpu.pipeline_mode<synchronous>, transform_indices = @transform_3, window_bounds = array<i64: 32, 32>}, {pipeline_mode = #tpu.pipeline_mode<synchronous>, transform_indices = @transform_4, window_bounds = array<i64: 3, 32>}, {transform_indices = @transform_5, window_bounds = array<i64: 2, 8, 32>}]} {
    %c0 = arith.constant 0 : index
    %c0_0 = arith.constant 0 : index
    %c0_1 = arith.constant 0 : index
    %0 = vector.load %arg1[%c0, %c0_0, %c0_1] : memref<2x8x32xf32, #tpu.memory_space<vmem>>, vector<2x8x32xf32>
    %1 = vector.shape_cast %0 : vector<2x8x32xf32> to vector<16x32xf32>
    %c0_2 = arith.constant 0 : index
    %c0_3 = arith.constant 0 : index
    %2 = vector.load %arg2[%c0_2, %c0_3] : memref<32x96xf32, #tpu.memory_space<vmem>>, vector<32x96xf32>
    %cst = arith.constant dense<0.000000e+00> : vector<16x96xf32>
    %3 = tpu.matmul %1, %2, %cst {dimension_numbers = #tpu.dot_dimension_numbers<[1], [0], [0], [1], [0, 0, 1, 1], [], []>} : vector<16x32xf32>, vector<32x96xf32>, vector<16x96xf32> -> vector<16x96xf32>
    %c0_4 = arith.constant 0 : index
    %c0_5 = arith.constant 0 : index
    %4 = vector.load %arg3[%c0_4, %c0_5] : memref<1x96xf32, #tpu.memory_space<vmem>>, vector<1x96xf32>
    %5 = vector.broadcast %4 : vector<1x96xf32> to vector<16x96xf32>
    %6 = arith.addf %3, %5 : vector<16x96xf32>
    %c0_6 = arith.constant 0 : index
    %c0_7 = arith.constant 0 : index
    %7 = vector.load %arg5[%c0_6, %c0_7] : memref<3x32xf32, #tpu.memory_space<vmem>>, vector<1x32xf32>
    %c1 = arith.constant 1 : index
    %c0_8 = arith.constant 0 : index
    %8 = vector.load %arg5[%c1, %c0_8] : memref<3x32xf32, #tpu.memory_space<vmem>>, vector<1x32xf32>
    %c2 = arith.constant 2 : index
    %c0_9 = arith.constant 0 : index
    %9 = vector.load %arg5[%c2, %c0_9] : memref<3x32xf32, #tpu.memory_space<vmem>>, vector<1x32xf32>
    %10 = vector.broadcast %7 : vector<1x32xf32> to vector<16x32xf32>
    %11 = arith.addf %1, %10 : vector<16x32xf32>
    %12 = vector.extract_strided_slice %6 {offsets = [0, 0], sizes = [16, 8], strides = [1, 1]} : vector<16x96xf32> to vector<16x8xf32>
    %13 = vector.shape_cast %12 : vector<16x8xf32> to vector<2x8x8xf32>
    %14 = vector.extract_strided_slice %6 {offsets = [0, 32], sizes = [16, 8], strides = [1, 1]} : vector<16x96xf32> to vector<16x8xf32>
    %15 = vector.shape_cast %14 : vector<16x8xf32> to vector<2x8x8xf32>
    %16 = vector.extract_strided_slice %6 {offsets = [0, 64], sizes = [16, 8], strides = [1, 1]} : vector<16x96xf32> to vector<16x8xf32>
    %17 = vector.shape_cast %16 : vector<16x8xf32> to vector<2x8x8xf32>
    "tpu.trace_start"() <{level = 10 : i32, message = "bld,bmd->blm"}> : () -> ()
    %cst_10 = arith.constant dense<0.000000e+00> : vector<2x8x8xf32>
    %18 = tpu.matmul %13, %15, %cst_10 {dimension_numbers = #tpu.dot_dimension_numbers<[2], [2], [1], [1], [0, 0, 0, 1, 1, 1], [0], [0]>} : vector<2x8x8xf32>, vector<2x8x8xf32>, vector<2x8x8xf32> -> vector<2x8x8xf32>
    "tpu.trace_stop"() : () -> ()
    %cst_11 = arith.constant dense<0xFF800000> : vector<2x8xf32>
    %19 = vector.multi_reduction <maximumf>, %18, %cst_11 [2] : vector<2x8x8xf32> to vector<2x8xf32>
    %20 = vector.shape_cast %19 : vector<2x8xf32> to vector<2x8x1xf32>
    %21 = vector.broadcast %20 : vector<2x8x1xf32> to vector<2x8x8xf32>
    %22 = arith.subf %18, %21 : vector<2x8x8xf32>
    %23 = math.exp %22 : vector<2x8x8xf32>
    %cst_12 = arith.constant dense<0.000000e+00> : vector<2x8xf32>
    %24 = vector.multi_reduction <add>, %23, %cst_12 [2] : vector<2x8x8xf32> to vector<2x8xf32>
    %25 = vector.shape_cast %24 : vector<2x8xf32> to vector<2x8x1xf32>
    %26 = tpu.reciprocal %25 {approx = true} : vector<2x8x1xf32> -> vector<2x8x1xf32>
    %27 = vector.broadcast %26 : vector<2x8x1xf32> to vector<2x8x8xf32>
    %28 = arith.mulf %23, %27 : vector<2x8x8xf32>
    "tpu.trace_start"() <{level = 10 : i32, message = "blm,bmd->bld"}> : () -> ()
    %cst_13 = arith.constant dense<0.000000e+00> : vector<2x8x8xf32>
    %29 = tpu.matmul %28, %17, %cst_13 {dimension_numbers = #tpu.dot_dimension_numbers<[2], [1], [1], [2], [0, 0, 0, 1, 1, 2], [0], [0]>} : vector<2x8x8xf32>, vector<2x8x8xf32>, vector<2x8x8xf32> -> vector<2x8x8xf32>
    "tpu.trace_stop"() : () -> ()
    %30 = vector.shape_cast %29 : vector<2x8x8xf32> to vector<16x8xf32>
    %c0_14 = arith.constant 0 : index
    %c0_15 = arith.constant 0 : index
    %31 = vector.load %arg4[%c0_14, %c0_15] : memref<32x32xf32, #tpu.memory_space<vmem>>, vector<8x32xf32>
    %cst_16 = arith.constant dense<0.000000e+00> : vector<16x32xf32>
    %32 = tpu.matmul %30, %31, %cst_16 {dimension_numbers = #tpu.dot_dimension_numbers<[1], [0], [0], [1], [0, 0, 1, 1], [], []>} : vector<16x8xf32>, vector<8x32xf32>, vector<16x32xf32> -> vector<16x32xf32>
    %33 = arith.addf %11, %32 : vector<16x32xf32>
    %34 = vector.extract_strided_slice %6 {offsets = [0, 8], sizes = [16, 8], strides = [1, 1]} : vector<16x96xf32> to vector<16x8xf32>
    %35 = vector.shape_cast %34 : vector<16x8xf32> to vector<2x8x8xf32>
    %36 = vector.extract_strided_slice %6 {offsets = [0, 40], sizes = [16, 8], strides = [1, 1]} : vector<16x96xf32> to vector<16x8xf32>
    %37 = vector.shape_cast %36 : vector<16x8xf32> to vector<2x8x8xf32>
    %38 = vector.extract_strided_slice %6 {offsets = [0, 72], sizes = [16, 8], strides = [1, 1]} : vector<16x96xf32> to vector<16x8xf32>
    %39 = vector.shape_cast %38 : vector<16x8xf32> to vector<2x8x8xf32>
    "tpu.trace_start"() <{level = 10 : i32, message = "bld,bmd->blm"}> : () -> ()
    %cst_17 = arith.constant dense<0.000000e+00> : vector<2x8x8xf32>
    %40 = tpu.matmul %35, %37, %cst_17 {dimension_numbers = #tpu.dot_dimension_numbers<[2], [2], [1], [1], [0, 0, 0, 1, 1, 1], [0], [0]>} : vector<2x8x8xf32>, vector<2x8x8xf32>, vector<2x8x8xf32> -> vector<2x8x8xf32>
    "tpu.trace_stop"() : () -> ()
    %cst_18 = arith.constant dense<0xFF800000> : vector<2x8xf32>
    %41 = vector.multi_reduction <maximumf>, %40, %cst_18 [2] : vector<2x8x8xf32> to vector<2x8xf32>
    %42 = vector.shape_cast %41 : vector<2x8xf32> to vector<2x8x1xf32>
    %43 = vector.broadcast %42 : vector<2x8x1xf32> to vector<2x8x8xf32>
    %44 = arith.subf %40, %43 : vector<2x8x8xf32>
    %45 = math.exp %44 : vector<2x8x8xf32>
    %cst_19 = arith.constant dense<0.000000e+00> : vector<2x8xf32>
    %46 = vector.multi_reduction <add>, %45, %cst_19 [2] : vector<2x8x8xf32> to vector<2x8xf32>
    %47 = vector.shape_cast %46 : vector<2x8xf32> to vector<2x8x1xf32>
    %48 = tpu.reciprocal %47 {approx = true} : vector<2x8x1xf32> -> vector<2x8x1xf32>
    %49 = vector.broadcast %48 : vector<2x8x1xf32> to vector<2x8x8xf32>
    %50 = arith.mulf %45, %49 : vector<2x8x8xf32>
    "tpu.trace_start"() <{level = 10 : i32, message = "blm,bmd->bld"}> : () -> ()
    %cst_20 = arith.constant dense<0.000000e+00> : vector<2x8x8xf32>
    %51 = tpu.matmul %50, %39, %cst_20 {dimension_numbers = #tpu.dot_dimension_numbers<[2], [1], [1], [2], [0, 0, 0, 1, 1, 2], [0], [0]>} : vector<2x8x8xf32>, vector<2x8x8xf32>, vector<2x8x8xf32> -> vector<2x8x8xf32>
    "tpu.trace_stop"() : () -> ()
    %52 = vector.shape_cast %51 : vector<2x8x8xf32> to vector<16x8xf32>
    %c8 = arith.constant 8 : index
    %c0_21 = arith.constant 0 : index
    %53 = vector.load %arg4[%c8, %c0_21] : memref<32x32xf32, #tpu.memory_space<vmem>>, vector<8x32xf32>
    %cst_22 = arith.constant dense<0.000000e+00> : vector<16x32xf32>
    %54 = tpu.matmul %52, %53, %cst_22 {dimension_numbers = #tpu.dot_dimension_numbers<[1], [0], [0], [1], [0, 0, 1, 1], [], []>} : vector<16x8xf32>, vector<8x32xf32>, vector<16x32xf32> -> vector<16x32xf32>
    %55 = arith.addf %33, %54 : vector<16x32xf32>
    %56 = vector.extract_strided_slice %6 {offsets = [0, 16], sizes = [16, 8], strides = [1, 1]} : vector<16x96xf32> to vector<16x8xf32>
    %57 = vector.shape_cast %56 : vector<16x8xf32> to vector<2x8x8xf32>
    %58 = vector.extract_strided_slice %6 {offsets = [0, 48], sizes = [16, 8], strides = [1, 1]} : vector<16x96xf32> to vector<16x8xf32>
    %59 = vector.shape_cast %58 : vector<16x8xf32> to vector<2x8x8xf32>
    %60 = vector.extract_strided_slice %6 {offsets = [0, 80], sizes = [16, 8], strides = [1, 1]} : vector<16x96xf32> to vector<16x8xf32>
    %61 = vector.shape_cast %60 : vector<16x8xf32> to vector<2x8x8xf32>
    "tpu.trace_start"() <{level = 10 : i32, message = "bld,bmd->blm"}> : () -> ()
    %cst_23 = arith.constant dense<0.000000e+00> : vector<2x8x8xf32>
    %62 = tpu.matmul %57, %59, %cst_23 {dimension_numbers = #tpu.dot_dimension_numbers<[2], [2], [1], [1], [0, 0, 0, 1, 1, 1], [0], [0]>} : vector<2x8x8xf32>, vector<2x8x8xf32>, vector<2x8x8xf32> -> vector<2x8x8xf32>
    "tpu.trace_stop"() : () -> ()
    %cst_24 = arith.constant dense<0xFF800000> : vector<2x8xf32>
    %63 = vector.multi_reduction <maximumf>, %62, %cst_24 [2] : vector<2x8x8xf32> to vector<2x8xf32>
    %64 = vector.shape_cast %63 : vector<2x8xf32> to vector<2x8x1xf32>
    %65 = vector.broadcast %64 : vector<2x8x1xf32> to vector<2x8x8xf32>
    %66 = arith.subf %62, %65 : vector<2x8x8xf32>
    %67 = math.exp %66 : vector<2x8x8xf32>
    %cst_25 = arith.constant dense<0.000000e+00> : vector<2x8xf32>
    %68 = vector.multi_reduction <add>, %67, %cst_25 [2] : vector<2x8x8xf32> to vector<2x8xf32>
    %69 = vector.shape_cast %68 : vector<2x8xf32> to vector<2x8x1xf32>
    %70 = tpu.reciprocal %69 {approx = true} : vector<2x8x1xf32> -> vector<2x8x1xf32>
    %71 = vector.broadcast %70 : vector<2x8x1xf32> to vector<2x8x8xf32>
    %72 = arith.mulf %67, %71 : vector<2x8x8xf32>
    "tpu.trace_start"() <{level = 10 : i32, message = "blm,bmd->bld"}> : () -> ()
    %cst_26 = arith.constant dense<0.000000e+00> : vector<2x8x8xf32>
    %73 = tpu.matmul %72, %61, %cst_26 {dimension_numbers = #tpu.dot_dimension_numbers<[2], [1], [1], [2], [0, 0, 0, 1, 1, 2], [0], [0]>} : vector<2x8x8xf32>, vector<2x8x8xf32>, vector<2x8x8xf32> -> vector<2x8x8xf32>
    "tpu.trace_stop"() : () -> ()
    %74 = vector.shape_cast %73 : vector<2x8x8xf32> to vector<16x8xf32>
    %c16 = arith.constant 16 : index
    %c0_27 = arith.constant 0 : index
    %75 = vector.load %arg4[%c16, %c0_27] : memref<32x32xf32, #tpu.memory_space<vmem>>, vector<8x32xf32>
    %cst_28 = arith.constant dense<0.000000e+00> : vector<16x32xf32>
    %76 = tpu.matmul %74, %75, %cst_28 {dimension_numbers = #tpu.dot_dimension_numbers<[1], [0], [0], [1], [0, 0, 1, 1], [], []>} : vector<16x8xf32>, vector<8x32xf32>, vector<16x32xf32> -> vector<16x32xf32>
    %77 = arith.addf %55, %76 : vector<16x32xf32>
    %78 = vector.extract_strided_slice %6 {offsets = [0, 24], sizes = [16, 8], strides = [1, 1]} : vector<16x96xf32> to vector<16x8xf32>
    %79 = vector.shape_cast %78 : vector<16x8xf32> to vector<2x8x8xf32>
    %80 = vector.extract_strided_slice %6 {offsets = [0, 56], sizes = [16, 8], strides = [1, 1]} : vector<16x96xf32> to vector<16x8xf32>
    %81 = vector.shape_cast %80 : vector<16x8xf32> to vector<2x8x8xf32>
    %82 = vector.extract_strided_slice %6 {offsets = [0, 88], sizes = [16, 8], strides = [1, 1]} : vector<16x96xf32> to vector<16x8xf32>
    %83 = vector.shape_cast %82 : vector<16x8xf32> to vector<2x8x8xf32>
    "tpu.trace_start"() <{level = 10 : i32, message = "bld,bmd->blm"}> : () -> ()
    %cst_29 = arith.constant dense<0.000000e+00> : vector<2x8x8xf32>
    %84 = tpu.matmul %79, %81, %cst_29 {dimension_numbers = #tpu.dot_dimension_numbers<[2], [2], [1], [1], [0, 0, 0, 1, 1, 1], [0], [0]>} : vector<2x8x8xf32>, vector<2x8x8xf32>, vector<2x8x8xf32> -> vector<2x8x8xf32>
    "tpu.trace_stop"() : () -> ()
    %cst_30 = arith.constant dense<0xFF800000> : vector<2x8xf32>
    %85 = vector.multi_reduction <maximumf>, %84, %cst_30 [2] : vector<2x8x8xf32> to vector<2x8xf32>
    %86 = vector.shape_cast %85 : vector<2x8xf32> to vector<2x8x1xf32>
    %87 = vector.broadcast %86 : vector<2x8x1xf32> to vector<2x8x8xf32>
    %88 = arith.subf %84, %87 : vector<2x8x8xf32>
    %89 = math.exp %88 : vector<2x8x8xf32>
    %cst_31 = arith.constant dense<0.000000e+00> : vector<2x8xf32>
    %90 = vector.multi_reduction <add>, %89, %cst_31 [2] : vector<2x8x8xf32> to vector<2x8xf32>
    %91 = vector.shape_cast %90 : vector<2x8xf32> to vector<2x8x1xf32>
    %92 = tpu.reciprocal %91 {approx = true} : vector<2x8x1xf32> -> vector<2x8x1xf32>
    %93 = vector.broadcast %92 : vector<2x8x1xf32> to vector<2x8x8xf32>
    %94 = arith.mulf %89, %93 : vector<2x8x8xf32>
    "tpu.trace_start"() <{level = 10 : i32, message = "blm,bmd->bld"}> : () -> ()
    %cst_32 = arith.constant dense<0.000000e+00> : vector<2x8x8xf32>
    %95 = tpu.matmul %94, %83, %cst_32 {dimension_numbers = #tpu.dot_dimension_numbers<[2], [1], [1], [2], [0, 0, 0, 1, 1, 2], [0], [0]>} : vector<2x8x8xf32>, vector<2x8x8xf32>, vector<2x8x8xf32> -> vector<2x8x8xf32>
    "tpu.trace_stop"() : () -> ()
    %96 = vector.shape_cast %95 : vector<2x8x8xf32> to vector<16x8xf32>
    %c24 = arith.constant 24 : index
    %c0_33 = arith.constant 0 : index
    %97 = vector.load %arg4[%c24, %c0_33] : memref<32x32xf32, #tpu.memory_space<vmem>>, vector<8x32xf32>
    %cst_34 = arith.constant dense<0.000000e+00> : vector<16x32xf32>
    %98 = tpu.matmul %96, %97, %cst_34 {dimension_numbers = #tpu.dot_dimension_numbers<[1], [0], [0], [1], [0, 0, 1, 1], [], []>} : vector<16x8xf32>, vector<8x32xf32>, vector<16x32xf32> -> vector<16x32xf32>
    %99 = arith.addf %77, %98 : vector<16x32xf32>
    %cst_35 = arith.constant dense<0.000000e+00> : vector<16xf32>
    %100 = vector.multi_reduction <add>, %99, %cst_35 [1] : vector<16x32xf32> to vector<16xf32>
    %101 = vector.shape_cast %100 : vector<16xf32> to vector<16x1xf32>
    %cst_36 = arith.constant 3.200000e+01 : f32
    %102 = vector.broadcast %cst_36 : f32 to vector<16x1xf32>
    %103 = arith.divf %101, %102 : vector<16x1xf32>
    %104 = arith.mulf %99, %99 : vector<16x32xf32>
    %cst_37 = arith.constant dense<0.000000e+00> : vector<16xf32>
    %105 = vector.multi_reduction <add>, %104, %cst_37 [1] : vector<16x32xf32> to vector<16xf32>
    %106 = vector.shape_cast %105 : vector<16xf32> to vector<16x1xf32>
    %cst_38 = arith.constant 3.200000e+01 : f32
    %107 = vector.broadcast %cst_38 : f32 to vector<16x1xf32>
    %108 = arith.divf %106, %107 : vector<16x1xf32>
    %109 = arith.mulf %103, %103 : vector<16x1xf32>
    %110 = arith.subf %108, %109 : vector<16x1xf32>
    %111 = vector.broadcast %103 : vector<16x1xf32> to vector<16x32xf32>
    %112 = arith.subf %99, %111 : vector<16x32xf32>
    %cst_39 = arith.constant 9.99999974E-6 : f32
    %113 = vector.broadcast %cst_39 : f32 to vector<16x1xf32>
    %114 = arith.addf %110, %113 : vector<16x1xf32>
    %115 = math.rsqrt %114 : vector<16x1xf32>
    %116 = vector.broadcast %115 : vector<16x1xf32> to vector<16x32xf32>
    %117 = arith.mulf %112, %116 : vector<16x32xf32>
    %118 = vector.broadcast %8 : vector<1x32xf32> to vector<16x32xf32>
    %119 = arith.mulf %117, %118 : vector<16x32xf32>
    %120 = vector.broadcast %9 : vector<1x32xf32> to vector<16x32xf32>
    %121 = arith.addf %119, %120 : vector<16x32xf32>
    %122 = vector.shape_cast %121 : vector<16x32xf32> to vector<2x8x32xf32>
    %c0_40 = arith.constant 0 : index
    %c0_41 = arith.constant 0 : index
    %c0_42 = arith.constant 0 : index
    %123 = vector.load %arg6[%c0_40, %c0_41, %c0_42] : memref<2x8x32xf32, #tpu.memory_space<vmem>>, vector<2x8x32xf32>
    tpu.vector_store %arg6[%c0_40, %c0_41, %c0_42], %122 {strides = array<i32>} : memref<2x8x32xf32, #tpu.memory_space<vmem>>, vector<2x8x32xf32>,
    return
  }
  func.func @transform_0(%arg0: i32) -> (i32, i32, i32) {
    %c0_i32 = arith.constant 0 : i32
    %c0_i32_0 = arith.constant 0 : i32
    %c0_i32_1 = arith.constant 0 : i32
    return %arg0, %c0_i32, %c0_i32_0 : i32, i32, i32
  }
  func.func @transform_1(%arg0: i32) -> (i32, i32) {
    %c0_i32 = arith.constant 0 : i32
    %c0_i32_0 = arith.constant 0 : i32
    %c0_i32_1 = arith.constant 0 : i32
    return %c0_i32, %c0_i32_0 : i32, i32
  }
  func.func @transform_2(%arg0: i32) -> (i32, i32) {
    %c0_i32 = arith.constant 0 : i32
    %c0_i32_0 = arith.constant 0 : i32
    %c0_i32_1 = arith.constant 0 : i32
    return %c0_i32, %c0_i32_0 : i32, i32
  }
  func.func @transform_3(%arg0: i32) -> (i32, i32) {
    %c0_i32 = arith.constant 0 : i32
    %c0_i32_0 = arith.constant 0 : i32
    %c0_i32_1 = arith.constant 0 : i32
    return %c0_i32, %c0_i32_0 : i32, i32
  }
  func.func @transform_4(%arg0: i32) -> (i32, i32) {
    %c0_i32 = arith.constant 0 : i32
    %c0_i32_0 = arith.constant 0 : i32
    %c0_i32_1 = arith.constant 0 : i32
    return %c0_i32, %c0_i32_0 : i32, i32
  }
  func.func @transform_5(%arg0: i32) -> (i32, i32, i32) {
    %c0_i32 = arith.constant 0 : i32
    %c0_i32_0 = arith.constant 0 : i32
    %c0_i32_1 = arith.constant 0 : i32
    return %arg0, %c0_i32, %c0_i32_0 : i32, i32, i32
  }
}

</mosaic_0001>

<bundles_post_ra>
// kernel: tpu_custom_call.1
= control target key start
LH: loop header
LB: loop body
LE: loop exit
PB: predicated region body
PF: predicated region fallthrough
CT: control target
= control target key end

     0   :  { %10 = vsyncpa [#allocation3], 0  ;;  %s2465_s0 = inlined_call_operand.hbm [shape: f32[2,8,32], index: 0, kind: input, shape index: {}]   ;;  %s2466_s1 = inlined_call_operand.hbm [shape: f32[32,96], index: 1, kind: input, shape index: {}]   ;;  %s2467_s2 = inlined_call_operand.vmem [shape: f32[1,96], index: 2, kind: input, shape index: {}]   ;;  %s2468_s3 = inlined_call_operand.hbm [shape: f32[32,32], index: 3, kind: input, shape index: {}]   ;;  %s2469_s4 = inlined_call_operand.vmem [shape: f32[3,32], index: 4, kind: input, shape index: {}]   ;;  %s2470_s5 = inlined_call_operand.hbm [shape: f32[2,8,32], index: 5, kind: output, shape index: {}]  }
   0x1   :  { %11 = vsyncpa [#allocation6], 0 }
   0x2   :  { %12 = vsyncpa [#allocation4], 0  ;;  %s2224_s18 = smov [#allocation5]   ;;  %s2225_s20 = smov [#allocation2]  }
   0x3   :  { %s30_s19 = sshll.u32 %s2224_s18, 4  ;;  %s18_s21 = sshll.u32 %s2225_s20, 4  ;;  %s31_s19 = int_to_ptr.vmem [resolvable:$true] %s30_s19  ;;  %s19_s21 = int_to_ptr.vmem [resolvable:$true] %s18_s21 }
   0x4   :  { %s2146_s22 = scalar_lea.vmem %s31_s19, 512  ;;  %p2151_p1 = scmp.lt.s32.totalorder %s31_s19, %s31_s19 }
   0x5   :  { %p2147_p0 = scmp.ne.s32.totalorder %s31_s19, %s2146_s22  ;;  %p2152_p2 = scmp.lt.s32.totalorder %s2146_s22, %s2146_s22 }
   0x7   :  { %p2153_p3 = por %p2152_p2, %p2151_p1 }
   0x9   :  { %p2154_p4 = pnand %p2153_p3, %p2147_p0 }
   0xb   :  { %2157 = shalt.err (!%p2154_p4)
}
   0xc   :  { %s2226_s23 = smov 128   ;;  %s2227_s24 = smov 8  }
   0xd   :  { %36 = dma.hbm_to_vmem [thread:$0]  %s2466_s1, 512, %s31_s19, [#allocation6], %s2226_s23, %s2226_s23, %s2227_s24  }
   0xe   :  { %s2166_s27 = scalar_lea.vmem %s19_s21, 256  ;;  %p2171_p6 = scmp.lt.s32.totalorder %s19_s21, %s19_s21 }
   0xf   :  { %p2167_p5 = scmp.ne.s32.totalorder %s19_s21, %s2166_s27  ;;  %p2172_p7 = scmp.lt.s32.totalorder %s2166_s27, %s2166_s27 }
  0x11   :  { %p2173_p8 = por %p2172_p7, %p2171_p6 }
  0x13   :  { %p2174_p9 = pnand %p2173_p8, %p2167_p5 }
  0x15   :  { %2177 = shalt.err (!%p2174_p9)
}
  0x16   :  { %24 = dma.hbm_to_vmem [thread:$0]  %s2465_s0, 256, %s19_s21, [#allocation3], %s2226_s23, %s2226_s23, %s2227_s24  }
  0x17   :  { %s2228_s30 = smov [#allocation7]  }
  0x18   :  { %s44_s6 = sshll.u32 %s2228_s30, 4  ;;  %s45_s6 = int_to_ptr.vmem [resolvable:$true] %s44_s6 }
  0x19   :  { %s2186_s7 = scalar_lea.vmem %s45_s6, 512  ;;  %p2191_p11 = scmp.lt.s32.totalorder %s45_s6, %s45_s6 }
  0x1a   :  { %p2187_p10 = scmp.ne.s32.totalorder %s45_s6, %s2186_s7  ;;  %p2192_p12 = scmp.lt.s32.totalorder %s2186_s7, %s2186_s7 }
  0x1c   :  { %p2193_p13 = por %p2192_p12, %p2191_p11 }
  0x1e   :  { %p2194_p0 = pnand %p2193_p13, %p2187_p10 }
  0x20   :  { %2197 = shalt.err (!%p2194_p0)
}
  0x21   :  { %50 = dma.hbm_to_vmem [thread:$0]  %s2468_s3, 512, %s45_s6, [#allocation6], %s2226_s23, %s2226_s23, %s2227_s24  }
  0x22   :  { %2218 = dma.done.wait [#allocation3], 256  }
  0x23   :  { %2219 = vsyncadd [#allocation3], 4294967040 }
  0x24   :  { %2220 = dma.done.wait [#allocation6], 1024  }
  0x25   :  { %2221 = vsyncadd [#allocation6], 4294966272  ;;  %vm75_vm0 = vcmask 261120   ;;  %v67_v0 = vld [vmem:[#allocation5 + $0x18] sm:$0xff]  ;;  %v66_v1 = vld [vmem:[#allocation5 + $0x10] sm:$0xff]  ;;  %v2229_v6 = vmov 0.0  }
  0x26   :  { %1972 = vmatprep.subr.mxu0 %v67_v0  ;;  %v2291_v2 = vld [vmem:[#allocation2] sm:$0xff]  ;;  %v65_v3 = vld [vmem:[#allocation5 + $0x8] sm:$0xff]  ;;  %v64_v4 = vld [vmem:[#allocation5] sm:$0xff]  ;;  %1983 = vmatprep.subr.mxu1 %v2229_v6  ;;  %vm2230_vm1 = vmmov 0   ;;  %s2231_s9 = smov 96   ;;  %vm169_vm2 = vcmask 64512  }
  0x27   :  { %1973 = vmatpush3.msra.mxu0 %v67_v0  ;;  %1980 = vmatprep.mubr.msk.f32.mxu0 %vm75_vm0, %v2291_v2  ;;  %v2295_v5 = vld [vmem:[#allocation2 + $0x8] sm:$0xff]  ;;  %v1884_v8 = vld [vmem:[%s2467_s2] ss:$0 sm:$0xff]  ;;  %s2232_s2 = smov 64   ;;  %s2233_s10 = smov 120   ;;  %v495_v40 = vld [vmem:[#allocation7] sm:$0xff] }
  0x28   :  { %1974 = vmatprep.subr.mxu0 %v66_v1  ;;  %1985 = vmatprep.mubr.msk.f32.mxu1 %vm2230_vm1, %v2229_v6  ;;  %s2234_s11 = smov 88   ;;  %v2361_v55 = vld [vmem:[%s2469_s4] ss:$0 sm:$0xff]  ;;  %s2235_s14 = smov 56  }
  0x29   :  { %1975 = vmatpush3.msra.mxu0 %v66_v1  ;;  %v164_v56 = vadd.f32 %v2361_v55, %v2291_v2  ;;  %s2236_s15 = smov 112   ;;  %s2237_s16 = smov 80  }
  0x2a   :  { %1976 = vmatprep.subr.mxu0 %v65_v3  ;;  %s2238_s17 = smov 48   ;;  %s2239_s18 = smov 72  }
  0x2b   :  { %1977 = vmatpush3.msra.mxu0 %v65_v3  ;;  %s2240_s19 = smov 104   ;;  %s2241_s20 = smov 40  }
  0x2c   :  { %1978 = vmatprep.subr.mxu0 %v64_v4  ;;  %s2242_s27 = smov [#allocation8]  }
  0x2d   :  { %1979 = vmatpush3.msra.mxu0 %v64_v4  ;;  %s1871_s28 = sshll.u32 %s2242_s27, 4  ;;  %s1872_s28 = int_to_ptr.vmem [resolvable:$true] %s1871_s28 }
  0x2e   :  { %1981 = vmatmul.mubr.msk.f32.vlgmr.msra.gmra.mxu0 %vm75_vm0, %v2295_v5  ;;  %1993 = vmatprep.subr.mxu0 %v2229_v6  ;;  %s2198_s29 = scalar_lea.vmem %s1872_s28, 256  ;;  %p2203_p2 = scmp.lt.s32.totalorder %s1872_s28, %s1872_s28 }
  0x2f   :  { %1995 = vmatprep.mubr.msk.f32.mxu0 %vm2230_vm1, %v2229_v6  ;;  %p2199_p1 = scmp.ne.s32.totalorder %s1872_s28, %s2198_s29  ;;  %p2204_p3 = scmp.lt.s32.totalorder %s2198_s29, %s2198_s29 }
  0x31   :  { %p2205_p4 = por %p2204_p3, %p2203_p2 }
  0x33   :  { %p2206_p5 = pnand %p2205_p4, %p2199_p1 }
  0xee   :  { %v1982_v7 = vpop.f32.mrf.mxu0 }
  0xef   :  { %v2311_v11 = vadd.f32 %v1982_v7, %v1884_v8 }
  0xf0   :  { %v148_v9 = vpop.f32.mrf.mxu0 }
  0xf1   :  { %v2308_v10 = vadd.f32 %v1884_v8, %v148_v9 }
  0xf3   :  { %167 = vrot.lane.b32.xlu0 %v2308_v10, %s2231_s9 }
  0xf7   :  { %245 = vrot.lane.b32.xlu0 %v2311_v11, %s2231_s9 }
 0x165   :  { %v168_v12 = vpop.permute.xlu0 %167 }
 0x166   :  { %1984 = vmatpush3.xpose.msk.msra.mxu1 %vm169_vm2, %v168_v12 }
 0x167   :  { %1988 = vmatprep.subr.mxu1 %v2229_v6 }
 0x169   :  { %1986 = vmatmul.mubr.msk.f32.vlgmr.msra.gmra.mxu1 %vm169_vm2, %v2308_v10  ;;  %v246_v13 = vpop.permute.xlu0 %245 }
 0x16a   :  { %1989 = vmatpush3.xpose.msk.msra.mxu1 %vm169_vm2, %v246_v13  ;;  %1990 = vmatprep.mubr.msk.f32.mxu1 %vm2230_vm1, %v2229_v6 }
 0x16b   :  { %1998 = vmatprep.subr.mxu1 %v2229_v6 }
 0x16d   :  { %1991 = vmatmul.mubr.msk.f32.vlgmr.msra.gmra.mxu1 %vm169_vm2, %v2311_v11 }
 0x16e   :  { %2000 = vmatprep.mubr.msk.f32.mxu1 %vm2230_vm1, %v2229_v6 }
 0x229   :  { %v240_v14 = vpop.f32.mrf.mxu1 }
 0x22a   :  { %v321_v15 = vsel %vm169_vm2, %v240_v14, -inf }
 0x22b   :  { %322 = vmax.xlane.f32.xlu1 %v321_v15  ;;  %v1987_v16 = vpop.f32.mrf.mxu1 }
 0x22d   :  { %v317_v17 = vpop.f32.mrf.mxu1 }
 0x22e   :  { %v324_v18 = vsel %vm169_vm2, %v317_v17, -inf }
 0x22f   :  { %325 = vmax.xlane.f32.xlu1 %v324_v18  ;;  %v1992_v19 = vpop.f32.mrf.mxu1  ;;  %v909_v18 = vld [vmem:[#allocation7 + $0x8] sm:$0xff] }
 0x240   :  { %343 = vrot.lane.b32.xlu1 %v2308_v10, %s2232_s2 }
 0x2b4   :  { %v323_v20 = vpop.xlane.xlu1 %322 }
 0x2b5   :  { %v327_v21 = vsub.f32 %v240_v14, %v323_v20 }
 0x2b7   :  { %v329_v22 = vmul.f32 1.442695, %v327_v21 }
 0x2b8   :  { %v326_v23 = vpop.xlane.xlu1 %325 }
 0x2b9   :  { %2102 = vpow2.f32 %v329_v22  ;;  %v328_v24 = vsub.f32 %v317_v17, %v326_v23 }
 0x2bb   :  { %v331_v25 = vmul.f32 1.442695, %v328_v24 }
 0x2bc   :  { %v344_v26 = vpop.permute.xlu1 %343 }
 0x2bd   :  { %2104 = vpow2.f32 %v331_v25  ;;  %1994 = vmatpush3.msra.mxu0 %v344_v26 }
 0x2be   :  { %2003 = vmatprep.subr.mxu0 %v495_v40 }
 0x2c6   :  { %v2103_v27 = vpop.eup %2102 }
 0x2c7   :  { %v333_v28 = vsel %vm169_vm2, %v2103_v27, 0.0 }
 0x2c8   :  { %334 = vadd.xlane.f32.xlu0 %v333_v28 }
 0x2ca   :  { %v2105_v29 = vpop.eup %2104 }
 0x2cb   :  { %v336_v30 = vsel %vm169_vm2, %v2105_v29, 0.0 }
 0x2cc   :  { %337 = vadd.xlane.f32.xlu1 %v336_v30 }
 0x2dd   :  { %419 = vrot.lane.b32.xlu1 %v2311_v11, %s2232_s2 }
 0x2de   :  { %579 = vrot.lane.b32.xlu0 %v2308_v10, %s2233_s10 }
 0x2e1   :  { %581 = vrot.lane.b32.xlu1 %v2308_v10, %s2234_s11 }
 0x2e5   :  { %659 = vrot.lane.b32.xlu1 %v2311_v11, %s2234_s11 }
 0x2e9   :  { %657 = vrot.lane.b32.xlu1 %v2311_v11, %s2233_s10 }
 0x351   :  { %v335_v31 = vpop.xlane.xlu0 %334 }
 0x352   :  { %2106 = vrcp.f32 %v335_v31 }
 0x355   :  { %v338_v32 = vpop.xlane.xlu1 %337  ;;  %v580_v39 = vpop.permute.xlu0 %579 }
 0x356   :  { %2108 = vrcp.f32 %v338_v32 }
 0x359   :  { %v420_v33 = vpop.permute.xlu1 %419 }
 0x35a   :  { %1999 = vmatpush3.msra.mxu1 %v420_v33  ;;  %v165_v33 = vadd.f32 %v2361_v55, %v2295_v5 }
 0x35b   :  { %2008 = vmatprep.subr.mxu1 %v2229_v6 }
 0x35d   :  { %v582_v38 = vpop.permute.xlu1 %581 }
 0x35f   :  { %v2107_v34 = vpop.eup %2106 }
 0x360   :  { %v341_v35 = vmul.f32 %v2107_v34, %v2103_v27 }
 0x361   :  { %v660_v42 = vpop.permute.xlu1 %659 }
 0x362   :  { %1996 = vmatmul.mubr.msk.f32.vlgmr.msra.gmra.mxu0 %vm169_vm2, %v341_v35 }
 0x363   :  { %v2109_v36 = vpop.eup %2108  ;;  %2004 = vmatpush3.msra.mxu0 %v495_v40 }
 0x364   :  { %v342_v37 = vmul.f32 %v2109_v36, %v2105_v29  ;;  %2013 = vmatprep.subr.mxu0 %v2229_v6 }
 0x365   :  { %v658_v46 = vpop.permute.xlu1 %657 }
 0x366   :  { %2001 = vmatmul.mubr.msk.f32.vlgmr.msra.gmra.mxu1 %vm169_vm2, %v342_v37 }
 0x367   :  { %2009 = vmatpush3.xpose.msk.msra.mxu1 %vm169_vm2, %v582_v38  ;;  %2010 = vmatprep.mubr.msk.f32.mxu1 %vm2230_vm1, %v2229_v6 }
 0x368   :  { %2018 = vmatprep.subr.mxu1 %v2229_v6 }
 0x36a   :  { %2011 = vmatmul.mubr.msk.f32.vlgmr.msra.gmra.mxu1 %vm169_vm2, %v580_v39 }
 0x36b   :  { %2020 = vmatprep.mubr.msk.f32.mxu1 %vm2230_vm1, %v2229_v6 }
 0x422   :  { %v415_v41 = vpop.f32.mrf.mxu0 }
 0x423   :  { %2005 = vmatprep.mubr.msk.f32.mxu0 %vm169_vm2, %v415_v41 }
 0x424   :  { %v1997_v43 = vpop.f32.mrf.mxu0 }
 0x426   :  { %v491_v44 = vpop.f32.mrf.mxu1 }
 0x427   :  { %2006 = vmatmul.mubr.msk.f32.vlgmr.msra.gmra.mxu0 %vm169_vm2, %v491_v44 }
 0x428   :  { %2014 = vmatpush3.xpose.msk.msra.mxu0 %vm169_vm2, %v660_v42  ;;  %v2002_v45 = vpop.f32.mrf.mxu1  ;;  %2015 = vmatprep.mubr.msk.f32.mxu0 %vm2230_vm1, %v2229_v6 }
 0x429   :  { %2023 = vmatprep.subr.mxu0 %v2229_v6 }
 0x42a   :  { %v653_v47 = vpop.f32.mrf.mxu1 }
 0x42b   :  { %2016 = vmatmul.mubr.msk.f32.vlgmr.msra.gmra.mxu0 %vm169_vm2, %v658_v46  ;;  %v735_v48 = vsel %vm169_vm2, %v653_v47, -inf }
 0x42c   :  { %736 = vmax.xlane.f32.xlu1 %v735_v48  ;;  %v2012_v49 = vpop.f32.mrf.mxu1  ;;  %2025 = vmatprep.mubr.msk.f32.mxu0 %vm2230_vm1, %v2229_v6 }
 0x4b5   :  { %v737_v50 = vpop.xlane.xlu1 %736 }
 0x4b6   :  { %v741_v51 = vsub.f32 %v653_v47, %v737_v50  ;;  %v1323_v50 = vld [vmem:[#allocation7 + $0x10] sm:$0xff] }
 0x4b8   :  { %v743_v52 = vmul.f32 1.442695, %v741_v51 }
 0x4ba   :  { %2110 = vpow2.f32 %v743_v52 }
 0x4c7   :  { %v2111_v53 = vpop.eup %2110 }
 0x4c8   :  { %v747_v54 = vsel %vm169_vm2, %v2111_v53, 0.0 }
 0x4c9   :  { %748 = vadd.xlane.f32.xlu1 %v747_v54 }
 0x4e7   :  { %v2365_v57 = vpop.f32.mrf.mxu0 }
 0x4e8   :  { %v578_v34 = vadd.f32 %v2365_v57, %v165_v33 }
 0x4e9   :  { %v568_v58 = vpop.f32.mrf.mxu0 }
 0x4ea   :  { %v2367_v59 = vadd.f32 %v568_v58, %v164_v56 }
 0x4eb   :  { %v731_v60 = vpop.f32.mrf.mxu0 }
 0x4ec   :  { %v738_v61 = vsel %vm169_vm2, %v731_v60, -inf }
 0x4ed   :  { %739 = vmax.xlane.f32.xlu0 %v738_v61  ;;  %v2017_v62 = vpop.f32.mrf.mxu0 }
 0x503   :  { %833 = vrot.lane.b32.xlu0 %v2311_v11, %s2235_s14 }
 0x507   :  { %993 = vrot.lane.b32.xlu0 %v2308_v10, %s2236_s15 }
 0x552   :  { %v749_v7 = vpop.xlane.xlu1 %748 }
 0x576   :  { %v740_v63 = vpop.xlane.xlu0 %739 }
 0x577   :  { %v742_v0 = vsub.f32 %v731_v60, %v740_v63 }
 0x579   :  { %v745_v1 = vmul.f32 1.442695, %v742_v0 }
 0x57a   :  { %v834_v2 = vpop.permute.xlu0 %833 }
 0x57b   :  { %2112 = vpow2.f32 %v745_v1  ;;  %2024 = vmatpush3.msra.mxu0 %v834_v2 }
 0x57c   :  { %2033 = vmatprep.subr.mxu0 %v2229_v6  ;;  %2114 = vrcp.f32 %v749_v7 }
 0x57e   :  { %v994_v17 = vpop.permute.xlu0 %993 }
 0x588   :  { %v2113_v3 = vpop.eup %2112 }
 0x589   :  { %v750_v4 = vsel %vm169_vm2, %v2113_v3, 0.0  ;;  %v2115_v9 = vpop.eup %2114 }
 0x58a   :  { %751 = vadd.xlane.f32.xlu1 %v750_v4  ;;  %v755_v13 = vmul.f32 %v2115_v9, %v2111_v53 }
 0x59b   :  { %757 = vrot.lane.b32.xlu1 %v2308_v10, %s2235_s14 }
 0x59f   :  { %995 = vrot.lane.b32.xlu1 %v2308_v10, %s2237_s16 }
 0x5a3   :  { %1073 = vrot.lane.b32.xlu1 %v2311_v11, %s2237_s16 }
 0x5a7   :  { %1071 = vrot.lane.b32.xlu1 %v2311_v11, %s2236_s15 }
 0x613   :  { %v752_v8 = vpop.xlane.xlu1 %751 }
 0x614   :  { %2116 = vrcp.f32 %v752_v8 }
 0x617   :  { %v758_v12 = vpop.permute.xlu1 %757 }
 0x618   :  { %2019 = vmatpush3.msra.mxu1 %v758_v12 }
 0x619   :  { %2021 = vmatmul.mubr.msk.f32.vlgmr.msra.gmra.mxu1 %vm169_vm2, %v755_v13  ;;  %2028 = vmatprep.subr.mxu1 %v909_v18 }
 0x61a   :  { %2029 = vmatpush3.msra.mxu1 %v909_v18 }
 0x61b   :  { %v996_v16 = vpop.permute.xlu1 %995  ;;  %2038 = vmatprep.subr.mxu1 %v2229_v6 }
 0x61f   :  { %v1074_v21 = vpop.permute.xlu1 %1073 }
 0x621   :  { %v2117_v14 = vpop.eup %2116 }
 0x622   :  { %v756_v15 = vmul.f32 %v2117_v14, %v2113_v3 }
 0x623   :  { %v1072_v24 = vpop.permute.xlu1 %1071 }
 0x624   :  { %2026 = vmatmul.mubr.msk.f32.vlgmr.msra.gmra.mxu0 %vm169_vm2, %v756_v15 }
 0x625   :  { %2034 = vmatpush3.xpose.msk.msra.mxu0 %vm169_vm2, %v996_v16  ;;  %2035 = vmatprep.mubr.msk.f32.mxu0 %vm2230_vm1, %v2229_v6 }
 0x626   :  { %2043 = vmatprep.subr.mxu0 %v2229_v6 }
 0x628   :  { %2036 = vmatmul.mubr.msk.f32.vlgmr.msra.gmra.mxu0 %vm169_vm2, %v994_v17 }
 0x629   :  { %2045 = vmatprep.mubr.msk.f32.mxu0 %vm2230_vm1, %v2229_v6 }
 0x6d9   :  { %v829_v19 = vpop.f32.mrf.mxu1 }
 0x6da   :  { %2030 = vmatprep.mubr.msk.f32.mxu1 %vm169_vm2, %v829_v19 }
 0x6db   :  { %v2022_v20 = vpop.f32.mrf.mxu1 }
 0x6e4   :  { %v905_v22 = vpop.f32.mrf.mxu0 }
 0x6e5   :  { %2031 = vmatmul.mubr.msk.f32.vlgmr.msra.gmra.mxu1 %vm169_vm2, %v905_v22 }
 0x6e6   :  { %2039 = vmatpush3.xpose.msk.msra.mxu1 %vm169_vm2, %v1074_v21  ;;  %v2027_v23 = vpop.f32.mrf.mxu0  ;;  %2040 = vmatprep.mubr.msk.f32.mxu1 %vm2230_vm1, %v2229_v6 }
 0x6e7   :  { %2048 = vmatprep.subr.mxu1 %v2229_v6 }
 0x6e8   :  { %v1067_v25 = vpop.f32.mrf.mxu0 }
 0x6e9   :  { %2041 = vmatmul.mubr.msk.f32.vlgmr.msra.gmra.mxu1 %vm169_vm2, %v1072_v24  ;;  %v1149_v26 = vsel %vm169_vm2, %v1067_v25, -inf }
 0x6ea   :  { %1150 = vmax.xlane.f32.xlu0 %v1149_v26  ;;  %v2037_v27 = vpop.f32.mrf.mxu0  ;;  %2050 = vmatprep.mubr.msk.f32.mxu1 %vm2230_vm1, %v2229_v6  ;;  %v1737_v26 = vld [vmem:[#allocation7 + $0x18] sm:$0xff] }
 0x773   :  { %v1151_v28 = vpop.xlane.xlu0 %1150 }
 0x774   :  { %v1155_v29 = vsub.f32 %v1067_v25, %v1151_v28 }
 0x776   :  { %v1157_v30 = vmul.f32 1.442695, %v1155_v29 }
 0x778   :  { %2118 = vpow2.f32 %v1157_v30 }
 0x785   :  { %v2119_v31 = vpop.eup %2118 }
 0x786   :  { %v1161_v32 = vsel %vm169_vm2, %v2119_v31, 0.0 }
 0x787   :  { %1162 = vadd.xlane.f32.xlu0 %v1161_v32 }
 0x7a5   :  { %v2032_v35 = vpop.f32.mrf.mxu1 }
 0x7a6   :  { %v2402_v36 = vadd.f32 %v2032_v35, %v578_v34 }
 0x7a7   :  { %v982_v37 = vpop.f32.mrf.mxu1 }
 0x7a8   :  { %v2405_v38 = vadd.f32 %v982_v37, %v2367_v59 }
 0x7a9   :  { %v1145_v39 = vpop.f32.mrf.mxu1 }
 0x7aa   :  { %v1152_v40 = vsel %vm169_vm2, %v1145_v39, -inf }
 0x7ab   :  { %1153 = vmax.xlane.f32.xlu1 %v1152_v40  ;;  %v2042_v41 = vpop.f32.mrf.mxu1 }
 0x7bc   :  { %1171 = vrot.lane.b32.xlu1 %v2308_v10, %s2238_s17 }
 0x7c0   :  { %1409 = vrot.lane.b32.xlu1 %v2308_v10, %s2239_s18 }
 0x7c4   :  { %1487 = vrot.lane.b32.xlu1 %v2311_v11, %s2239_s18 }
 0x7c8   :  { %1485 = vrot.lane.b32.xlu1 %v2311_v11, %s2240_s19 }
 0x810   :  { %v1163_v5 = vpop.xlane.xlu0 %1162 }
 0x811   :  { %2120 = vrcp.f32 %v1163_v5 }
 0x81e   :  { %v2121_v43 = vpop.eup %2120 }
 0x81f   :  { %v1169_v47 = vmul.f32 %v2121_v43, %v2119_v31 }
 0x834   :  { %v1154_v42 = vpop.xlane.xlu1 %1153 }
 0x835   :  { %v1156_v44 = vsub.f32 %v1145_v39, %v1154_v42 }
 0x837   :  { %v1159_v45 = vmul.f32 1.442695, %v1156_v44 }
 0x838   :  { %v1172_v46 = vpop.permute.xlu1 %1171 }
 0x839   :  { %2122 = vpow2.f32 %v1159_v45  ;;  %2044 = vmatpush3.msra.mxu0 %v1172_v46 }
 0x83a   :  { %2046 = vmatmul.mubr.msk.f32.vlgmr.msra.gmra.mxu0 %vm169_vm2, %v1169_v47  ;;  %2053 = vmatprep.subr.mxu0 %v1323_v50 }
 0x83b   :  { %2054 = vmatpush3.msra.mxu0 %v1323_v50 }
 0x83c   :  { %2063 = vmatprep.subr.mxu0 %v2229_v6  ;;  %v1410_v55 = vpop.permute.xlu1 %1409 }
 0x840   :  { %v1488_v59 = vpop.permute.xlu1 %1487 }
 0x844   :  { %v1486_v62 = vpop.permute.xlu1 %1485 }
 0x846   :  { %v2123_v48 = vpop.eup %2122 }
 0x847   :  { %v1164_v49 = vsel %vm169_vm2, %v2123_v48, 0.0 }
 0x848   :  { %1165 = vadd.xlane.f32.xlu0 %v1164_v49 }
 0x85e   :  { %1247 = vrot.lane.b32.xlu0 %v2311_v11, %s2238_s17 }
 0x862   :  { %1407 = vrot.lane.b32.xlu0 %v2308_v10, %s2240_s19 }
 0x8d1   :  { %v1166_v51 = vpop.xlane.xlu0 %1165 }
 0x8d2   :  { %2124 = vrcp.f32 %v1166_v51 }
 0x8d5   :  { %v1248_v52 = vpop.permute.xlu0 %1247 }
 0x8d6   :  { %2049 = vmatpush3.msra.mxu1 %v1248_v52 }
 0x8d7   :  { %2058 = vmatprep.subr.mxu1 %v2229_v6 }
 0x8d9   :  { %v1408_v56 = vpop.permute.xlu0 %1407 }
 0x8df   :  { %v2125_v53 = vpop.eup %2124 }
 0x8e0   :  { %v1170_v54 = vmul.f32 %v2125_v53, %v2123_v48 }
 0x8e2   :  { %2051 = vmatmul.mubr.msk.f32.vlgmr.msra.gmra.mxu1 %vm169_vm2, %v1170_v54 }
 0x8e3   :  { %2059 = vmatpush3.xpose.msk.msra.mxu1 %vm169_vm2, %v1410_v55  ;;  %2060 = vmatprep.mubr.msk.f32.mxu1 %vm2230_vm1, %v2229_v6 }
 0x8e4   :  { %2068 = vmatprep.subr.mxu1 %v2229_v6 }
 0x8e6   :  { %2061 = vmatmul.mubr.msk.f32.vlgmr.msra.gmra.mxu1 %vm169_vm2, %v1408_v56 }
 0x8e7   :  { %2070 = vmatprep.mubr.msk.f32.mxu1 %vm2230_vm1, %v2229_v6 }
 0x8fa   :  { %v1243_v57 = vpop.f32.mrf.mxu0 }
 0x8fb   :  { %2055 = vmatprep.mubr.msk.f32.mxu0 %vm169_vm2, %v1243_v57 }
 0x8fc   :  { %v2047_v58 = vpop.f32.mrf.mxu0 }
 0x8fd   :  { %v1920_v58 = vld [vmem:[%s2469_s4 + $0x1] ss:$0 sm:$0xff] }
 0x9a2   :  { %v1319_v60 = vpop.f32.mrf.mxu1 }
 0x9a3   :  { %2056 = vmatmul.mubr.msk.f32.vlgmr.msra.gmra.mxu0 %vm169_vm2, %v1319_v60 }
 0x9a4   :  { %2064 = vmatpush3.xpose.msk.msra.mxu0 %vm169_vm2, %v1488_v59  ;;  %v2052_v61 = vpop.f32.mrf.mxu1  ;;  %2065 = vmatprep.mubr.msk.f32.mxu0 %vm2230_vm1, %v2229_v6 }
 0x9a5   :  { %2073 = vmatprep.subr.mxu0 %v2229_v6 }
 0x9a6   :  { %v1481_v63 = vpop.f32.mrf.mxu1 }
 0x9a7   :  { %2066 = vmatmul.mubr.msk.f32.vlgmr.msra.gmra.mxu0 %vm169_vm2, %v1486_v62  ;;  %v1563_v0 = vsel %vm169_vm2, %v1481_v63, -inf  ;;  %v1921_v62 = vld [vmem:[%s2469_s4 + $0x2] ss:$0 sm:$0xff] }
 0x9a8   :  { %1564 = vmax.xlane.f32.xlu0 %v1563_v0  ;;  %v2062_v1 = vpop.f32.mrf.mxu1  ;;  %2075 = vmatprep.mubr.msk.f32.mxu0 %vm2230_vm1, %v2229_v6 }
 0xa31   :  { %v1565_v2 = vpop.xlane.xlu0 %1564 }
 0xa32   :  { %v1569_v3 = vsub.f32 %v1481_v63, %v1565_v2 }
 0xa34   :  { %v1571_v4 = vmul.f32 1.442695, %v1569_v3 }
 0xa36   :  { %2126 = vpow2.f32 %v1571_v4 }
 0xa43   :  { %v2127_v7 = vpop.eup %2126 }
 0xa44   :  { %v1575_v8 = vsel %vm169_vm2, %v2127_v7, 0.0 }
 0xa45   :  { %1576 = vadd.xlane.f32.xlu0 %v1575_v8 }
 0xa63   :  { %v2057_v9 = vpop.f32.mrf.mxu0 }
 0xa64   :  { %v1406_v12 = vadd.f32 %v2057_v9, %v2402_v36 }
 0xa65   :  { %v1396_v13 = vpop.f32.mrf.mxu0 }
 0xa66   :  { %v1405_v14 = vadd.f32 %v1396_v13, %v2405_v38 }
 0xa67   :  { %v1559_v15 = vpop.f32.mrf.mxu0 }
 0xa68   :  { %v1566_v16 = vsel %vm169_vm2, %v1559_v15, -inf }
 0xa69   :  { %1567 = vmax.xlane.f32.xlu1 %v1566_v16  ;;  %v2067_v17 = vpop.f32.mrf.mxu0 }
 0xa7a   :  { %1585 = vrot.lane.b32.xlu1 %v2308_v10, %s2241_s20 }
 0xace   :  { %v1577_v6 = vpop.xlane.xlu0 %1576 }
 0xacf   :  { %2128 = vrcp.f32 %v1577_v6 }
 0xadc   :  { %v2129_v19 = vpop.eup %2128 }
 0xadd   :  { %v1583_v23 = vmul.f32 %v2129_v19, %v2127_v7 }
 0xaf2   :  { %v1568_v18 = vpop.xlane.xlu1 %1567 }
 0xaf3   :  { %v1570_v20 = vsub.f32 %v1559_v15, %v1568_v18 }
 0xaf5   :  { %v1573_v21 = vmul.f32 1.442695, %v1570_v20 }
 0xaf6   :  { %v1586_v22 = vpop.permute.xlu1 %1585 }
 0xaf7   :  { %2130 = vpow2.f32 %v1573_v21  ;;  %2069 = vmatpush3.msra.mxu1 %v1586_v22 }
 0xaf8   :  { %2071 = vmatmul.mubr.msk.f32.vlgmr.msra.gmra.mxu1 %vm169_vm2, %v1583_v23  ;;  %2078 = vmatprep.subr.mxu1 %v1737_v26 }
 0xaf9   :  { %2079 = vmatpush3.msra.mxu1 %v1737_v26 }
 0xb04   :  { %v2131_v24 = vpop.eup %2130 }
 0xb05   :  { %v1578_v25 = vsel %vm169_vm2, %v2131_v24, 0.0 }
 0xb06   :  { %1579 = vadd.xlane.f32.xlu0 %v1578_v25 }
 0xb1c   :  { %1661 = vrot.lane.b32.xlu0 %v2311_v11, %s2241_s20 }
 0xb8f   :  { %v1580_v10 = vpop.xlane.xlu0 %1579 }
 0xb90   :  { %2132 = vrcp.f32 %v1580_v10 }
 0xb93   :  { %v1662_v27 = vpop.permute.xlu0 %1661 }
 0xb94   :  { %2074 = vmatpush3.msra.mxu0 %v1662_v27 }
 0xb9d   :  { %v2133_v28 = vpop.eup %2132 }
 0xb9e   :  { %v1584_v29 = vmul.f32 %v2133_v28, %v2131_v24 }
 0xba0   :  { %2076 = vmatmul.mubr.msk.f32.vlgmr.msra.gmra.mxu0 %vm169_vm2, %v1584_v29 }
 0xbb8   :  { %v1657_v30 = vpop.f32.mrf.mxu1 }
 0xbb9   :  { %2080 = vmatprep.mubr.msk.f32.mxu1 %vm169_vm2, %v1657_v30 }
 0xbba   :  { %v2072_v31 = vpop.f32.mrf.mxu1 }
 0xc60   :  { %v1733_v32 = vpop.f32.mrf.mxu0 }
 0xc61   :  { %2081 = vmatmul.mubr.msk.f32.vlgmr.msra.gmra.mxu1 %vm169_vm2, %v1733_v32 }
 0xc62   :  { %v2077_v33 = vpop.f32.mrf.mxu0 }
 0xd21   :  { %v2082_v11 = vpop.f32.mrf.mxu1 }
 0xd22   :  { %v1820_v34 = vadd.f32 %v2082_v11, %v1406_v12 }
 0xd23   :  { %v1810_v35 = vpop.f32.mrf.mxu1 }
 0xd24   :  { %v1819_v36 = vadd.f32 %v1810_v35, %v1405_v14  ;;  %v1824_v37 = vsel %vm75_vm0, %v1820_v34, 0.0  ;;  %v1831_v38 = vmul.f32 %v1820_v34, %v1820_v34 }
 0xd25   :  { %1825 = vadd.xlane.f32.xlu0 %v1824_v37 }
 0xd26   :  { %v1821_v39 = vsel %vm75_vm0, %v1819_v36, 0.0  ;;  %v1830_v40 = vmul.f32 %v1819_v36, %v1819_v36  ;;  %v1835_v41 = vsel %vm75_vm0, %v1831_v38, 0.0 }
 0xd27   :  { %1822 = vadd.xlane.f32.xlu1 %v1821_v39 }
 0xd28   :  { %v1832_v5 = vsel %vm75_vm0, %v1830_v40, 0.0 }
 0xd29   :  { %1836 = vadd.xlane.f32.xlu0 %v1835_v41 }
 0xd2b   :  { %1833 = vadd.xlane.f32.xlu1 %v1832_v5 }
 0xdae   :  { %v1826_v42 = vpop.xlane.xlu0 %1825 }
 0xdaf   :  { %v1829_v43 = vmul.f32 0.03125, %v1826_v42 }
 0xdb0   :  { %v1823_v44 = vpop.xlane.xlu1 %1822 }
 0xdb1   :  { %v1828_v45 = vmul.f32 0.03125, %v1823_v44  ;;  %v1841_v47 = vmul.f32 %v1829_v43, %v1829_v43  ;;  %v1845_v56 = vsub.f32 %v1820_v34, %v1829_v43 }
 0xdb2   :  { %v1837_v46 = vpop.xlane.xlu0 %1836 }
 0xdb3   :  { %v1839_v48 = vmul.f32 0.03125, %v1837_v46  ;;  %v1840_v50 = vmul.f32 %v1828_v45, %v1828_v45  ;;  %v1844_v59 = vsub.f32 %v1819_v36, %v1828_v45 }
 0xdb4   :  { %v1834_v49 = vpop.xlane.xlu1 %1833 }
 0xdb5   :  { %v1843_v51 = vsub.f32 %v1839_v48, %v1841_v47  ;;  %v1838_v52 = vmul.f32 0.03125, %v1834_v49 }
 0xdb7   :  { %v1847_v53 = vadd.f32 1e-05, %v1843_v51  ;;  %v1842_v54 = vsub.f32 %v1838_v52, %v1840_v50 }
 0xdb9   :  { %2134 = vrsqrt.f32 %v1847_v53  ;;  %v1846_v55 = vadd.f32 1e-05, %v1842_v54 }
 0xdbb   :  { %2136 = vrsqrt.f32 %v1846_v55 }
 0xdc6   :  { %v2135_v57 = vpop.eup %2134 }
 0xdc7   :  { %v1851_v60 = vmul.f32 %v2135_v57, %v1845_v56 }
 0xdc8   :  { %v2137_v61 = vpop.eup %2136 }
 0xdc9   :  { %v1850_v63 = vmul.f32 %v2137_v61, %v1844_v59  ;;  %v1857_v0 = vmul.f32 %v1920_v58, %v1851_v60 }
 0xdcb   :  { %v1856_v1 = vmul.f32 %v1920_v58, %v1850_v63  ;;  %v1863_v2 = vadd.f32 %v1921_v62, %v1857_v0 }
 0xdcd   :  { %v1862_v3 = vadd.f32 %v1921_v62, %v1856_v1  ;;  %1865 = vst.msk [vmem:[#allocation8 + $0x8] sm:$0xff] %vm75_vm0, %v1863_v2 }
 0xdcf   :  { %1864 = vst.msk [vmem:[#allocation8] sm:$0xff] %vm75_vm0, %v1862_v3 }
 0xdd0   :  { %2209 = shalt.err (!%p2206_p5)
}
 0xdd1   :  { %1877 = dma.vmem_to_hbm [thread:$0]  %s1872_s28, 256, %s2470_s5, [#allocation4], %s2226_s23, %s2226_s23, %s2227_s24  }
 0xdd2   :  { %2222 = dma.done.wait [#allocation4], 256  }
 0xdd3   :  { %2223 = vsyncadd [#allocation4], 4294967040 }
 0xdd4   :  { %1881 = vsyncpa [#allocation3], 1 }
 0xdd5   :  { %1882 = vsyncpa [#allocation6], 1 }
 0xdd6   :  { %1883 = vsyncpa [#allocation4], 1 }

</bundles_post_ra>
